<compile_context>
chip_gen: v6e
topology: v6e:2x2x1
jax: 0.10.0
libtpu: 0.0.40
codegen_flags: <defaults>
</compile_context>

<pallas_src>
import functools
import math

import jax
import jax.numpy as jnp
from jax.experimental import pallas as pl
from jax.experimental.pallas import tpu as pltpu

CLAMP_MIN = 3.7835e-44            # PyTorch clamp floor (subnormal float32)
LOG_CLAMP = math.log(CLAMP_MIN)   # ~ -99.98, a normal float32


def _cdiv(a, b):
    return -(-a // b)


def _round_down(x, m):
    return max(m, (x // m) * m)


def _ncgm_kernel(theta_ref, z_ref, yt_ref, vec_ref, et_ref, *,
                 tl, L, tiles_per_core, need_mask):
    """One (core, L-tile) step: accumulate vector partials into output blocks.

    vec_ref : (8, nei) per-core block — row 0: sum_rows Z*(log(theta)-log(Z)),
                                        row 1: column sums of Z, rows 2-7: 0.
    et_ref  : (tl, 1)  per-core block — per-row-slot accumulated (yt-rowsum)^2.
    """
    h = pl.program_id(0)          # core / half index ("parallel")
    s = pl.program_id(1)          # tile step within this half ("arbitrary")

    @pl.when(s == 0)
    def _init():
        vec_ref[...] = jnp.zeros_like(vec_ref)
        et_ref[...] = jnp.zeros_like(et_ref)

    theta = theta_ref[...].astype(jnp.float32)        # (tl, nei)
    z = z_ref[...].astype(jnp.float32)                # (tl, nei)
    yt = yt_ref[...].astype(jnp.float32)              # (tl, 1)

    if need_mask:
        # Un-clamped logical tile index; rows >= L (ragged last tile or the
        # duplicated clamped tile of the second half) are masked out so they
        # contribute exactly 0 to every partial.
        tile_idx = h * tiles_per_core + s
        rows = tile_idx * tl + jax.lax.broadcasted_iota(jnp.int32, (tl, 1), 0)
        valid = rows < L                               # (tl, 1) bool
        theta = jnp.where(valid, theta, 1.0)           # log -> 0, stays finite
        z = jnp.where(valid, z, 0.0)

    # clamp(min=c).log() == max(log(x), log(c)) for x >= 0 (log is monotone);
    # avoids TPU subnormal flush turning the clamp into log(0) = -inf.
    theta_log = jnp.maximum(jnp.log(theta), LOG_CLAMP)
    z_log = jnp.maximum(jnp.log(z), LOG_CLAMP)

    # "+1" is folded out: obj_L = sum(Z*(log(theta)-log(Z))) + sum(Z), and
    # sum(Z) is recovered from the column totals in the wrapper.
    obj_elem = z * (theta_log - z_log)                 # (tl, nei)

    vec_ref[0:1, :] += jnp.sum(obj_elem, axis=0, keepdims=True)   # (1, nei)
    vec_ref[1:2, :] += jnp.sum(z, axis=0, keepdims=True)          # (1, nei)

    # et partial: Z.t().sum(0) == row sums of Z, compared against yt per row.
    row_sums = jnp.sum(z, axis=1, keepdims=True)       # (tl, 1)
    sq = yt - row_sums
    sq = sq * sq
    if need_mask:
        sq = jnp.where(valid, sq, 0.0)                 # garbage yt rows -> 0
    et_ref[...] += sq                                  # no per-step collapse


@functools.partial(jax.jit, static_argnames=("max_tile_rows",))
def ncgm_objective(theta, Z, yt, yt1, lam, *, max_tile_rows=1024):
    """Pallas wrapper. theta, Z: (L, nei); yt: (L,); yt1: (nei,); lam scalar."""
    L, nei = theta.shape
    assert Z.shape == (L, nei)

    # Stream theta/Z in their native low-precision dtype when possible (halves
    # the dominant HBM traffic); upcast to f32 inside the kernel.
    allowed = (jnp.float32, jnp.bfloat16, jnp.float16)
    if not any(theta.dtype == d for d in allowed):
        theta = theta.astype(jnp.float32)
    if not any(Z.dtype == d for d in allowed):
        Z = Z.astype(jnp.float32)
    yt_col = yt.astype(jnp.float32).reshape(L, 1)
    yt1_f = yt1.astype(jnp.float32).reshape(nei)
    lam_f = jnp.asarray(lam, jnp.float32)

    item = max(theta.dtype.itemsize, Z.dtype.itemsize)
    min_item = min(theta.dtype.itemsize, Z.dtype.itemsize)
    unit = {4: 8, 2: 16, 1: 32}.get(min_item, 32)      # sublane packing unit

    # ~2 MiB per (tl, nei) input tile: 2 inputs x 2 pipeline buffers + f32
    # temporaries stays well under v7x's 64 MiB VMEM.
    budget_rows = _round_down((2 * 1024 * 1024) // max(1, nei * item), unit)
    cap = max(unit, min(budget_rows, _round_down(int(max_tile_rows), unit)))

    if L <= cap:
        tl, num_tiles = L, 1                           # single full-dim tile
    else:
        tl = cap
        num_tiles = _cdiv(L, tl)                       # ragged last tile OK

    # Split the reduction into two halves on a leading "parallel" axis so v7x
    # can shard it across both TensorCores; serializes harmlessly elsewhere.
    ncores = 2 if num_tiles >= 2 else 1
    tiles_per_core = _cdiv(num_tiles, ncores)
    need_mask = (ncores * tiles_per_core * tl) != L

    def data_map(h, s):
        # Clamp so the DMA never walks past the last real tile; duplicated /
        # overhanging rows are masked to zero inside the kernel.
        return (jnp.minimum(h * tiles_per_core + s, num_tiles - 1), 0)

    kernel = functools.partial(_ncgm_kernel, tl=tl, L=L,
                               tiles_per_core=tiles_per_core,
                               need_mask=need_mask)

    in_tile = tl * nei * item
    f32_tile = tl * nei * 4
    vmem_limit = int(min(48 * 2**20,
                         max(16 * 2**20, 4 * in_tile + 6 * f32_tile + 4 * 2**20)))

    vec_out, et_out = pl.pallas_call(
        kernel,
        out_shape=(
            jax.ShapeDtypeStruct((ncores * 8, nei), jnp.float32),
            jax.ShapeDtypeStruct((ncores * tl, 1), jnp.float32),
        ),
        grid=(ncores, tiles_per_core),
        in_specs=[
            pl.BlockSpec((tl, nei), data_map),         # theta tile
            pl.BlockSpec((tl, nei), data_map),         # Z tile
            pl.BlockSpec((tl, 1), data_map),           # yt tile
        ],
        out_specs=(
            pl.BlockSpec((8, nei), lambda h, s: (h, 0)),   # per-core vec partials
            pl.BlockSpec((tl, 1), lambda h, s: (h, 0)),    # per-core et partials
        ),
        compiler_params=pltpu.CompilerParams(
            dimension_semantics=("parallel", "arbitrary"),
            vmem_limit_bytes=vmem_limit,
        ),
    )(theta, Z, yt_col)

    # Tiny final combine (O(nei + ncores*tl) work) in plain JAX.
    vec = vec_out.reshape(ncores, 8, nei)
    col_total = jnp.sum(vec[:, 1, :], axis=0)              # global column sums
    obj_L = jnp.sum(vec[:, 0, :]) + jnp.sum(col_total)     # "+1" term == sum(Z)
    et = jnp.sum(et_out)
    et1 = jnp.sum((yt1_f - col_total) ** 2)
    g = obj_L - lam_f * (et + et1)
    return -g


def ncgm_objective_ref(theta, Z, yt, yt1, lam):
    """Pure-JAX reference mirroring the PyTorch module (inputs >= 0 assumed)."""
    theta = theta.astype(jnp.float32)
    Z = Z.astype(jnp.float32)
    theta_log = jnp.maximum(jnp.log(theta), LOG_CLAMP)
    Z_log = jnp.maximum(jnp.log(Z), LOG_CLAMP)
    obj_L = jnp.sum(Z * (theta_log + 1.0 - Z_log))
    et = jnp.sum((yt.astype(jnp.float32) - jnp.sum(Z, axis=1)) ** 2)
    et1 = jnp.sum((yt1.astype(jnp.float32) - jnp.sum(Z, axis=0)) ** 2)
    return -(obj_L - lam * (et + et1))


if __name__ == "__main__":
    key = jax.random.PRNGKey(0)
    k1, k2, k3, k4 = jax.random.split(key, 4)

    # Small production-like shape (location_size x neighbor_size).
    L, nei = 16, 16
    theta = jax.random.uniform(k1, (L, nei), jnp.float32, 0.1, 1.0)
    Z = jax.random.uniform(k2, (L, nei), jnp.float32, 0.1, 1.0)
    yt = jax.random.uniform(k3, (L,), jnp.float32, 0.0, float(nei))
    yt1 = jax.random.uniform(k4, (nei,), jnp.float32, 0.0, float(L))
    lam = 0.5
    res = ncgm_objective(theta, Z, yt, yt1, lam)
    jax.block_until_ready(res)
    exp = ncgm_objective_ref(theta, Z, yt, yt1, lam)
    assert jnp.allclose(res, exp, rtol=1e-5, atol=1e-4), (res, exp)

    # Multi-tile: dual-half split, ragged last tile, clamped duplicate tile.
    L2, nei2 = 150, 256
    k5, k6, k7, k8 = jax.random.split(jax.random.PRNGKey(1), 4)
    theta2 = jax.random.uniform(k5, (L2, nei2), jnp.float32, 0.05, 2.0)
    Z2 = jax.random.uniform(k6, (L2, nei2), jnp.float32, 0.05, 2.0)
    yt2 = jax.random.uniform(k7, (L2,), jnp.float32, 0.0, float(nei2))
    yt12 = jax.random.uniform(k8, (nei2,), jnp.float32, 0.0, float(L2))
    res2 = ncgm_objective(theta2, Z2, yt2, yt12, 0.3, max_tile_rows=32)
    jax.block_until_ready(res2)
    exp2 = ncgm_objective_ref(theta2, Z2, yt2, yt12, 0.3)
    assert jnp.allclose(res2, exp2, rtol=1e-4, atol=1e-2), (res2, exp2)

    # bf16 inputs streamed natively (half the HBM bytes), upcast in-kernel.
    L3, nei3 = 96, 128
    k9, k10, k11, k12 = jax.random.split(jax.random.PRNGKey(2), 4)
    theta3 = jax.random.uniform(k9, (L3, nei3), jnp.float32, 0.1, 1.5).astype(jnp.bfloat16)
    Z3 = jax.random.uniform(k10, (L3, nei3), jnp.float32, 0.1, 1.5).astype(jnp.bfloat16)
    yt3 = jax.random.uniform(k11, (L3,), jnp.float32, 0.0, float(nei3))
    yt13 = jax.random.uniform(k12, (nei3,), jnp.float32, 0.0, float(L3))
    res3 = ncgm_objective(theta3, Z3, yt3, yt13, 0.7, max_tile_rows=32)
    jax.block_until_ready(res3)
    exp3 = ncgm_objective_ref(theta3, Z3, yt3, yt13, 0.7)
    assert jnp.allclose(res3, exp3, rtol=2e-3, atol=5e-2), (res3, exp3)

    print("KERNEL_OK")
</pallas_src>

<mosaic_0001>
module attributes {stable_mosaic.version = 11 : i64} {
  func.func @_ncgm_kernel(%arg0: i32, %arg1: i32, %arg2: memref<16x16xf32, #tpu.memory_space<vmem>>, %arg3: memref<16x16xf32, #tpu.memory_space<vmem>>, %arg4: memref<16x1xf32, #tpu.memory_space<vmem>>, %arg5: memref<8x16xf32, #tpu.memory_space<vmem>>, %arg6: memref<16x1xf32, #tpu.memory_space<vmem>>) attributes {dimension_semantics = [#tpu.dimension_semantics<parallel>, #tpu.dimension_semantics<arbitrary>], iteration_bounds = array<i64: 1, 1>, scalar_prefetch = 0 : i64, scratch_operands = 0 : i64, tpu.core_type = #tpu.core_type<tc>, window_params = [{transform_indices = @transform_0, window_bounds = array<i64: 16, 16>}, {transform_indices = @transform_1, window_bounds = array<i64: 16, 16>}, {transform_indices = @transform_2, window_bounds = array<i64: 16, 1>}, {transform_indices = @transform_3, window_bounds = array<i64: 8, 16>}, {transform_indices = @transform_4, window_bounds = array<i64: 16, 1>}]} {
    %c0_i32 = arith.constant 0 : i32
    %0 = arith.cmpi eq, %arg1, %c0_i32 : i32
    %1 = arith.extui %0 : i1 to i32
    %c0_i32_0 = arith.constant 0 : i32
    %2 = arith.cmpi ne, %1, %c0_i32_0 : i32
    scf.if %2 {
      %cst_21 = arith.constant 0.000000e+00 : f32
      %31 = vector.broadcast %cst_21 : f32 to vector<8x16xf32>
      %c0_22 = arith.constant 0 : index
      %c0_23 = arith.constant 0 : index
      %32 = vector.load %arg5[%c0_22, %c0_23] : memref<8x16xf32, #tpu.memory_space<vmem>>, vector<8x16xf32>
      tpu.vector_store %arg5[%c0_22, %c0_23], %31 {strides = array<i32>} : memref<8x16xf32, #tpu.memory_space<vmem>>, vector<8x16xf32>,
      %cst_24 = arith.constant 0.000000e+00 : f32
      %33 = vector.broadcast %cst_24 : f32 to vector<16x1xf32>
      %c0_25 = arith.constant 0 : index
      %c0_26 = arith.constant 0 : index
      %34 = vector.load %arg6[%c0_25, %c0_26] : memref<16x1xf32, #tpu.memory_space<vmem>>, vector<16x1xf32>
      tpu.vector_store %arg6[%c0_25, %c0_26], %33 {strides = array<i32>} : memref<16x1xf32, #tpu.memory_space<vmem>>, vector<16x1xf32>,
    } else {
    }
    %c0 = arith.constant 0 : index
    %c0_1 = arith.constant 0 : index
    %3 = vector.load %arg2[%c0, %c0_1] : memref<16x16xf32, #tpu.memory_space<vmem>>, vector<16x16xf32>
    %c0_2 = arith.constant 0 : index
    %c0_3 = arith.constant 0 : index
    %4 = vector.load %arg3[%c0_2, %c0_3] : memref<16x16xf32, #tpu.memory_space<vmem>>, vector<16x16xf32>
    %c0_4 = arith.constant 0 : index
    %c0_5 = arith.constant 0 : index
    %5 = vector.load %arg4[%c0_4, %c0_5] : memref<16x1xf32, #tpu.memory_space<vmem>>, vector<16x1xf32>
    %6 = math.log %3 : vector<16x16xf32>
    %cst = arith.constant -99.9830932 : f32
    %7 = vector.broadcast %cst : f32 to vector<16x16xf32>
    %8 = arith.maximumf %6, %7 : vector<16x16xf32>
    %9 = math.log %4 : vector<16x16xf32>
    %cst_6 = arith.constant -99.9830932 : f32
    %10 = vector.broadcast %cst_6 : f32 to vector<16x16xf32>
    %11 = arith.maximumf %9, %10 : vector<16x16xf32>
    %12 = arith.subf %8, %11 : vector<16x16xf32>
    %13 = arith.mulf %4, %12 : vector<16x16xf32>
    %c0_7 = arith.constant 0 : index
    %c0_8 = arith.constant 0 : index
    %14 = vector.load %arg5[%c0_7, %c0_8] : memref<8x16xf32, #tpu.memory_space<vmem>>, vector<1x16xf32>
    %cst_9 = arith.constant dense<0.000000e+00> : vector<16xf32>
    %15 = vector.multi_reduction <add>, %13, %cst_9 [0] : vector<16x16xf32> to vector<16xf32>
    %16 = vector.shape_cast %15 : vector<16xf32> to vector<1x16xf32>
    %17 = arith.addf %14, %16 : vector<1x16xf32>
    %c0_10 = arith.constant 0 : index
    %c0_11 = arith.constant 0 : index
    %18 = vector.load %arg5[%c0_10, %c0_11] : memref<8x16xf32, #tpu.memory_space<vmem>>, vector<1x16xf32>
    tpu.vector_store %arg5[%c0_10, %c0_11], %17 {strides = array<i32>} : memref<8x16xf32, #tpu.memory_space<vmem>>, vector<1x16xf32>,
    %c1 = arith.constant 1 : index
    %c0_12 = arith.constant 0 : index
    %19 = vector.load %arg5[%c1, %c0_12] : memref<8x16xf32, #tpu.memory_space<vmem>>, vector<1x16xf32>
    %cst_13 = arith.constant dense<0.000000e+00> : vector<16xf32>
    %20 = vector.multi_reduction <add>, %4, %cst_13 [0] : vector<16x16xf32> to vector<16xf32>
    %21 = vector.shape_cast %20 : vector<16xf32> to vector<1x16xf32>
    %22 = arith.addf %19, %21 : vector<1x16xf32>
    %c1_14 = arith.constant 1 : index
    %c0_15 = arith.constant 0 : index
    %23 = vector.load %arg5[%c1_14, %c0_15] : memref<8x16xf32, #tpu.memory_space<vmem>>, vector<1x16xf32>
    tpu.vector_store %arg5[%c1_14, %c0_15], %22 {strides = array<i32>} : memref<8x16xf32, #tpu.memory_space<vmem>>, vector<1x16xf32>,
    %cst_16 = arith.constant dense<0.000000e+00> : vector<16xf32>
    %24 = vector.multi_reduction <add>, %4, %cst_16 [1] : vector<16x16xf32> to vector<16xf32>
    %25 = vector.shape_cast %24 : vector<16xf32> to vector<16x1xf32>
    %26 = arith.subf %5, %25 : vector<16x1xf32>
    %27 = arith.mulf %26, %26 : vector<16x1xf32>
    %c0_17 = arith.constant 0 : index
    %c0_18 = arith.constant 0 : index
    %28 = vector.load %arg6[%c0_17, %c0_18] : memref<16x1xf32, #tpu.memory_space<vmem>>, vector<16x1xf32>
    %29 = arith.addf %28, %27 : vector<16x1xf32>
    %c0_19 = arith.constant 0 : index
    %c0_20 = arith.constant 0 : index
    %30 = vector.load %arg6[%c0_19, %c0_20] : memref<16x1xf32, #tpu.memory_space<vmem>>, vector<16x1xf32>
    tpu.vector_store %arg6[%c0_19, %c0_20], %29 {strides = array<i32>} : memref<16x1xf32, #tpu.memory_space<vmem>>, vector<16x1xf32>,
    return
  }
  func.func @transform_0(%arg0: i32, %arg1: i32) -> (i32, i32) {
    %c1_i32 = arith.constant 1 : i32
    %0 = arith.muli %arg0, %c1_i32 : i32
    %1 = arith.addi %0, %arg1 : i32
    %c0_i32 = arith.constant 0 : i32
    %2 = arith.minsi %1, %c0_i32 : i32
    %c0_i32_0 = arith.constant 0 : i32
    %c0_i32_1 = arith.constant 0 : i32
    return %2, %c0_i32_0 : i32, i32
  }
  func.func @transform_1(%arg0: i32, %arg1: i32) -> (i32, i32) {
    %c1_i32 = arith.constant 1 : i32
    %0 = arith.muli %arg0, %c1_i32 : i32
    %1 = arith.addi %0, %arg1 : i32
    %c0_i32 = arith.constant 0 : i32
    %2 = arith.minsi %1, %c0_i32 : i32
    %c0_i32_0 = arith.constant 0 : i32
    %c0_i32_1 = arith.constant 0 : i32
    return %2, %c0_i32_0 : i32, i32
  }
  func.func @transform_2(%arg0: i32, %arg1: i32) -> (i32, i32) {
    %c1_i32 = arith.constant 1 : i32
    %0 = arith.muli %arg0, %c1_i32 : i32
    %1 = arith.addi %0, %arg1 : i32
    %c0_i32 = arith.constant 0 : i32
    %2 = arith.minsi %1, %c0_i32 : i32
    %c0_i32_0 = arith.constant 0 : i32
    %c0_i32_1 = arith.constant 0 : i32
    return %2, %c0_i32_0 : i32, i32
  }
  func.func @transform_3(%arg0: i32, %arg1: i32) -> (i32, i32) {
    %c0_i32 = arith.constant 0 : i32
    %c0_i32_0 = arith.constant 0 : i32
    return %arg0, %c0_i32 : i32, i32
  }
  func.func @transform_4(%arg0: i32, %arg1: i32) -> (i32, i32) {
    %c0_i32 = arith.constant 0 : i32
    %c0_i32_0 = arith.constant 0 : i32
    return %arg0, %c0_i32 : i32, i32
  }
}

</mosaic_0001>

<bundles_post_ra>
// kernel: ncgm_objective.1
= control target key start
LH: loop header
LB: loop body
LE: loop exit
PB: predicated region body
PF: predicated region fallthrough
CT: control target
= control target key end

     0   :  { %10 = vsyncpa [#allocation3], 0  ;;  %s233_s15 = smov [#allocation2]   ;;  %s321_s0 = inlined_call_operand.vmem [shape: f32[16,16], index: 0, kind: input, shape index: {}]   ;;  %s322_s1 = inlined_call_operand.hbm [shape: f32[16,16], index: 1, kind: input, shape index: {}]   ;;  %s323_s2 = inlined_call_operand.vmem [shape: f32[16,1], index: 2, kind: input, shape index: {}]   ;;  %s324_s3 = inlined_call_operand.vmem [shape: f32[8,16], index: 3, kind: output, shape index: {0}]   ;;  %s325_s4 = inlined_call_operand.vmem [shape: f32[16,1], index: 4, kind: output, shape index: {1}]  }
   0x1   :  { %s36_s16 = sshll.u32 %s233_s15, 4  ;;  %s37_s16 = int_to_ptr.vmem [resolvable:$true] %s36_s16 }
   0x2   :  { %s219_s17 = scalar_lea.vmem %s37_s16, 256  ;;  %p224_p1 = scmp.lt.s32.totalorder %s37_s16, %s37_s16 }
   0x3   :  { %p220_p0 = scmp.ne.s32.totalorder %s37_s16, %s219_s17  ;;  %p225_p2 = scmp.lt.s32.totalorder %s219_s17, %s219_s17 }
   0x5   :  { %p226_p3 = por %p225_p2, %p224_p1 }
   0x7   :  { %p227_p4 = pnand %p226_p3, %p220_p0 }
   0x9   :  { %230 = shalt.err (!%p227_p4)
}
   0xa   :  { %s234_s18 = smov 128   ;;  %s235_s19 = smov 8  }
   0xb   :  { %42 = dma.hbm_to_vmem [thread:$0]  %s322_s1, 256, %s37_s16, [#allocation3], %s234_s18, %s234_s18, %s235_s19  }
   0xc   :  { %231 = dma.done.wait [#allocation3], 256  }
   0xd   :  { %232 = vsyncadd [#allocation3], 4294967040  ;;  %vm108_vm0 = vcmask 130048   ;;  %vm110_vm1 = vcmask 7168   ;;  %v236_v0 = vmov 0.0   ;;  %v115_v1 = vld [vmem:[#allocation2] sm:$0xff] }
   0xe   :  { %109 = vst.msk [vmem:[%s324_s3] sm:$0xff] %vm108_vm0, %v236_v0  ;;  %v113_v2 = vld [vmem:[%s321_s0] sm:$0xff]  ;;  %v116_v3 = vld [vmem:[#allocation2 + $0x8] sm:$0xff]  ;;  %v150_v4 = vsel %vm108_vm0, %v115_v1, 0.0  ;;  %vm147_vm2 = vcmask 122880  }
   0xf   :  { %111 = vst.msk [vmem:[%s325_s4] sm:$0xff] %vm110_vm1, %v236_v0  ;;  %112 = vst.msk [vmem:[%s325_s4 + $0x8] sm:$0xff] %vm110_vm1, %v236_v0  ;;  %203 = vlog2.f32 %v113_v2  ;;  %v151_v5 = vsel %vm108_vm0, %v116_v3, 0.0  ;;  %v114_v6 = vld [vmem:[%s321_s0 + $0x8] sm:$0xff]  ;;  %161 = vadd.xlane.f32.xlu0 %v150_v4  ;;  %v117_v43 = vld [vmem:[%s323_s2] sm:$0xff] }
  0x10   :  { %205 = vlog2.f32 %v115_v1  ;;  %v152_v7 = vadd.f32 %v151_v5, %v150_v4  ;;  %v118_v47 = vld [vmem:[%s323_s2 + $0x8] sm:$0xff] }
  0x11   :  { %207 = vlog2.f32 %v116_v3 }
  0x12   :  { %209 = vlog2.f32 %v114_v6  ;;  %v153_v8 = vrot.slane %v152_v7, 4 }
  0x13   :  { %163 = vadd.xlane.f32.xlu0 %v151_v5 }
  0x14   :  { %v154_v9 = vadd.f32 %v153_v8, %v152_v7 }
  0x15   :  { %v149_v13 = vld [vmem:[%s324_s3 + $0x1] sm:$0x1]  ;;  %v135_v40 = vld [vmem:[%s324_s3] sm:$0x1] }
  0x16   :  { %v155_v10 = vrot.slane %v154_v9, 2  ;;  %v169_v46 = vld [vmem:[%s325_s4] sm:$0xff]  ;;  %v170_v52 = vld [vmem:[%s325_s4 + $0x8] sm:$0xff] }
  0x18   :  { %v156_v11 = vadd.f32 %v155_v10, %v154_v9 }
  0x1a   :  { %v157_v12 = vrot.slane %v156_v11, 1 }
  0x1c   :  { %v204_v14 = vpop.eup %203  ;;  %v158_v15 = vadd.f32 %v157_v12, %v156_v11 }
  0x1d   :  { %v206_v16 = vpop.eup %205  ;;  %v120_v17 = vmul.f32 0.6931472, %v204_v14 }
  0x1e   :  { %v208_v18 = vpop.eup %207  ;;  %v126_v19 = vmul.f32 0.6931472, %v206_v16  ;;  %v159_v20 = vadd.f32 %v158_v15, %v149_v13 }
  0x1f   :  { %v210_v21 = vpop.eup %209  ;;  %v123_v22 = vmax.f32 %v120_v17, -99.98309  ;;  %v128_v23 = vmul.f32 0.6931472, %v208_v18 }
  0x20   :  { %v129_v24 = vmax.f32 %v126_v19, -99.98309  ;;  %v122_v25 = vmul.f32 0.6931472, %v210_v21  ;;  %160 = vst.msk [vmem:[%s324_s3 + $0x1] sm:$0x1] %vm147_vm2, %v159_v20 }
  0x21   :  { %v130_v26 = vmax.f32 %v128_v23, -99.98309 }
  0x22   :  { %v131_v27 = vsub.f32 %v123_v22, %v129_v24  ;;  %v124_v28 = vmax.f32 %v122_v25, -99.98309 }
  0x24   :  { %v133_v29 = vmul.f32 %v131_v27, %v115_v1  ;;  %v132_v30 = vsub.f32 %v124_v28, %v130_v26 }
  0x26   :  { %v137_v31 = vsel %vm108_vm0, %v133_v29, 0.0  ;;  %v134_v32 = vmul.f32 %v132_v30, %v116_v3 }
  0x28   :  { %v138_v33 = vsel %vm108_vm0, %v134_v32, 0.0 }
  0x29   :  { %v139_v34 = vadd.f32 %v138_v33, %v137_v31 }
  0x2b   :  { %v140_v35 = vrot.slane %v139_v34, 4 }
  0x2d   :  { %v141_v36 = vadd.f32 %v140_v35, %v139_v34 }
  0x2f   :  { %v142_v37 = vrot.slane %v141_v36, 2 }
  0x31   :  { %v143_v38 = vadd.f32 %v142_v37, %v141_v36 }
  0x33   :  { %v144_v39 = vrot.slane %v143_v38, 1 }
  0x35   :  { %v145_v41 = vadd.f32 %v144_v39, %v143_v38 }
  0x37   :  { %v146_v42 = vadd.f32 %v145_v41, %v135_v40 }
  0x39   :  { %148 = vst.msk [vmem:[%s324_s3] sm:$0x1] %vm147_vm2, %v146_v42 }
  0x98   :  { %v162_v44 = vpop.xlane.xlu0 %161 }
  0x99   :  { %v165_v45 = vsub.f32 %v117_v43, %v162_v44 }
  0x9b   :  { %v167_v48 = vmul.f32 %v165_v45, %v165_v45 }
  0x9c   :  { %v164_v49 = vpop.xlane.xlu0 %163 }
  0x9d   :  { %v171_v50 = vadd.f32 %v169_v46, %v167_v48  ;;  %v166_v51 = vsub.f32 %v118_v47, %v164_v49 }
  0x9f   :  { %174 = vst.msk [vmem:[%s325_s4] sm:$0xff] %vm110_vm1, %v171_v50  ;;  %v168_v53 = vmul.f32 %v166_v51, %v166_v51 }
  0xa1   :  { %v172_v54 = vadd.f32 %v170_v52, %v168_v53 }
  0xa3   :  { %175 = vst.msk [vmem:[%s325_s4 + $0x8] sm:$0xff] %vm110_vm1, %v172_v54 }
  0xa4   :  { %184 = vsyncpa [#allocation3], 1 }

</bundles_post_ra>
